<compile_context>
chip_gen: v5e
topology: v5e:2x2
jax: 0.10.0
libtpu: 0.0.40
codegen_flags: <defaults>
</compile_context>

<pallas_src>
import functools
import math

import numpy as np
import jax
import jax.numpy as jnp
from jax import lax
from jax.experimental import pallas as pl
from jax.experimental.pallas import tpu as pltpu


# Flip to jnp.bfloat16 on v6e/v7x for ~2x MXU throughput (constants are then
# pre-cast in the wrapper; accumulation stays f32 via preferred_element_type).
# Kept f32 by default so the tight correctness check passes on every gen.
MATMUL_DTYPE = jnp.float32


def _mm(a, b, dtype):
    """MXU matmul a[M,K] @ b[K,N], f32 accumulation."""
    if dtype != jnp.float32:
        a = a.astype(dtype)
        b = b.astype(dtype)
    return jnp.dot(a, b, preferred_element_type=jnp.float32)


def _mm_nt(a, b, dtype):
    """MXU matmul a[M,K] @ b[N,K]^T (contract last dims; no XLU transpose)."""
    if dtype != jnp.float32:
        a = a.astype(dtype)
        b = b.astype(dtype)
    return lax.dot_general(a, b, (((1,), (1,)), ((), ())),
                           preferred_element_type=jnp.float32)


# ----------------------------------------------------------------------------
# Pallas kernel: one block of Bt batch elements per grid step, heads stacked.
# ----------------------------------------------------------------------------
def moa_kernel(x_ref, a_ref, selw_ref, cosb_ref, sinb_ref, sincos_ref,
               wq_ref, wkv_ref, wposd_ref, wo_ref, o_ref, acc_ref,
               *, bt, n_heads, n_experts, proj, matmul_dtype):
    H, E, P = n_heads, n_experts, proj
    T = x_ref.shape[0] // bt
    S = a_ref.shape[0] // bt
    D2 = cosb_ref.shape[1]

    # ---- batch-block-wide projections (one MXU issue each) ------------------
    q_all = _mm(x_ref[...], wq_ref[...], matmul_dtype)       # [Bt*T, E*P] scaled
    kv = _mm(a_ref[...], wkv_ref[...], matmul_dtype)         # [Bt*S, 2P] (k scaled)
    selw = selw_ref[...]                                      # [Bt*T, 2*H*E]

    # ---- head/batch-stacked q: rows ordered (b, h, t) -----------------------
    rows = []
    for b in range(bt):
        qa = q_all[b * T:(b + 1) * T]                         # [T, E*P]
        for h in range(H):
            oh = selw[b * T:(b + 1) * T, h * E:(h + 1) * E]   # [T, E] one-hot
            q_bh = oh[:, 0:1] * qa[:, 0:P]
            for e in range(1, E):
                q_bh = q_bh + oh[:, e:e + 1] * qa[:, e * P:(e + 1) * P]
            rows.append(q_bh)
    q_big = jnp.concatenate(rows, axis=0)                     # [Bt*H*T, P]

    # ---- shift-free relative-position term, fused over batch AND heads ------
    #   q . k_pos[S-1+j-t] = (qs*cos_t + qc*sin_t) . sin(w j)
    #                      + (qc*cos_t - qs*sin_t) . cos(w j)
    qt = _mm(q_big, wposd_ref[...], matmul_dtype)             # [Bt*H*T, D]
    qs, qc = qt[:, :D2], qt[:, D2:]
    cos_t, sin_t = cosb_ref[...], sinb_ref[...]               # [Bt*H*T, D2]
    pos_lhs = jnp.concatenate([qs * cos_t + qc * sin_t,
                               qc * cos_t - qs * sin_t], axis=1)  # [Bt*H*T, D]
    pos = _mm(pos_lhs, sincos_ref[...], matmul_dtype)         # [Bt*H*T, S]

    # ---- per batch element: content scores, softmax, values, gated scatter --
    for b in range(bt):
        k_b = kv[b * S:(b + 1) * S, :P]                       # [S, P]
        v_b = kv[b * S:(b + 1) * S, P:]                       # [S, P]
        q_b = q_big[b * H * T:(b + 1) * H * T]                # [H*T, P]

        att = pos[b * H * T:(b + 1) * H * T] + _mm_nt(q_b, k_b, matmul_dtype)
        att = att - jnp.max(att, axis=-1, keepdims=True)
        p_exp = jnp.exp(att)
        att = p_exp * pl.reciprocal(jnp.sum(p_exp, axis=-1, keepdims=True),
                                    approx=True)
        res = _mm(att, v_b, matmul_dtype)                     # [H*T, P]

        # gated expert-concat row block, written once into the VMEM scratch
        blocks = []
        for e in range(E):
            acc_e = None
            for h in range(H):
                c0 = H * E + h * E + e
                g = selw[b * T:(b + 1) * T, c0:c0 + 1]        # [T, 1] gate*onehot
                contrib = g * res[h * T:(h + 1) * T]
                acc_e = contrib if acc_e is None else acc_e + contrib
            blocks.append(acc_e)
        acc_ref[b * T:(b + 1) * T, :] = jnp.concatenate(blocks, axis=1)

    # ---- single fused output projection (lane-dense, padded to Opad) --------
    out = _mm(acc_ref[...], wo_ref[...], matmul_dtype)        # [Bt*T, Opad]
    o_ref[...] = out.astype(o_ref.dtype)


# ----------------------------------------------------------------------------
# Glue (plain JAX)
# ----------------------------------------------------------------------------
@functools.lru_cache(maxsize=16)
def _pos_tables(d_model: int, length: int):
    """Absolute-position sin/cos tables [length, d_model//2], cached on shape."""
    inv = np.exp(np.arange(0, d_model, 2, dtype=np.float32)
                 * (-math.log(10000.0) / d_model))
    ang = np.arange(length, dtype=np.float32)[:, None] * inv[None, :]
    return jnp.asarray(np.sin(ang), jnp.float32), jnp.asarray(np.cos(ang), jnp.float32)


def _pick_bt(batch: int, n_heads: int, seq: int, target_rows: int = 256) -> int:
    """Largest divisor of `batch` keeping the stacked M-dim near target_rows."""
    want = max(1, target_rows // max(1, n_heads * seq))
    bt = 1
    for d in range(1, batch + 1):
        if batch % d == 0 and d <= want:
            bt = d
    return bt


def sinusoidal_pos_embedding(d_model: int, length: int) -> jnp.ndarray:
    """Relative positions -(length-1) .. (length-1) -> [2*length-1, d_model]."""
    pos = jnp.arange(-(length - 1), length, dtype=jnp.float32)[:, None]
    div = jnp.exp(jnp.arange(0, d_model, 2, dtype=jnp.float32)
                  * (-math.log(10000.0) / d_model))
    pe = jnp.zeros((2 * length - 1, d_model), jnp.float32)
    pe = pe.at[:, 0::2].set(jnp.sin(pos * div))
    pe = pe.at[:, 1::2].set(jnp.cos(pos * div))
    return pe


def init_params(key, state_size=32, n_heads=2, n_experts=4):
    input_size = state_size
    output_size = state_size
    P = state_size // n_heads
    std_in = math.sqrt(1.0 / input_size)
    std_out = math.sqrt(1.0 / (n_heads * P))
    std_pos = math.sqrt(1.0 / input_size)
    ks = jax.random.split(key, 5)

    data_to_q = jax.random.normal(ks[0], (n_experts, input_size, P), jnp.float32) * std_in
    data_to_kv = jax.random.normal(ks[1], (input_size, 2 * P), jnp.float32) * std_in
    out_proj = jax.random.normal(ks[2], (n_experts, P, output_size), jnp.float32) * std_out
    pos_to_pk = jax.random.normal(ks[3], (P, input_size), jnp.float32) * std_pos
    sel_dst = jax.random.normal(ks[4], (n_experts, input_size), jnp.float32) * std_in

    # renorm_rows (matches torch: unbiased std)
    std_t = jnp.std(sel_dst, axis=-1, keepdims=True, ddof=1)
    sel_dst = sel_dst / jnp.linalg.norm(sel_dst, axis=-1, keepdims=True)
    sel_dst = sel_dst * (std_t / jnp.std(sel_dst, ddof=1))

    scale = jnp.full((1,), 1.0 / math.sqrt(P), jnp.float32)
    return dict(data_to_q=data_to_q, data_to_kv=data_to_kv, out_proj=out_proj,
                pos_to_pk=pos_to_pk, sel_dst=sel_dst, scale=scale)


def moa_forward(curr_state, attend_to, params, n_heads,
                matmul_dtype=MATMUL_DTYPE, batch_block=None):
    B, T, D = curr_state.shape
    S = attend_to.shape[1]
    assert T == S, "pos_offset=None path requires curr_state and attend_to to match"
    assert D % 2 == 0
    E, _, P = params["data_to_q"].shape
    O = params["out_proj"].shape[-1]
    H = n_heads
    D2 = D // 2
    Bt = batch_block or _pick_bt(B, H, T)
    assert B % Bt == 0

    # --- expert selection (tiny top-k; plain JAX) ----------------------------
    sel_logits = curr_state @ params["sel_dst"].T                # [B, T, E]
    sel_val, sel_idx = lax.top_k(sel_logits, H)                  # [B, T, H]
    gate = jax.nn.sigmoid(sel_val)                               # selection_mode='sigmoid'
    onehot = jax.nn.one_hot(sel_idx, E, dtype=jnp.float32)       # [B, T, H, E]
    gated = onehot * gate[..., None]
    selw = jnp.concatenate(                                      # [B*T, 2*H*E]
        [onehot.reshape(B * T, H * E), gated.reshape(B * T, H * E)], axis=-1)

    # --- constant weight preparation (scale folded, experts concatenated) ----
    scale = jnp.sqrt(params["scale"]).astype(jnp.float32)[0]     # P**-0.25
    wq_cat = jnp.transpose(params["data_to_q"], (1, 0, 2)).reshape(D, E * P) * scale
    kv_col_scale = jnp.concatenate([jnp.ones((P,), jnp.float32) * scale,
                                    jnp.ones((P,), jnp.float32)])
    wkv = params["data_to_kv"] * kv_col_scale[None, :]           # k half scaled
    # de-interleaved positional projection (sin dims first, cos dims second)
    wpos = params["pos_to_pk"] * scale                           # [P, D]
    wpos_d = jnp.concatenate([wpos[:, 0::2], wpos[:, 1::2]], axis=1)
    # lane-dense (padded) fused output projection
    Opad = ((O + 127) // 128) * 128
    wo_cat = params["out_proj"].reshape(E * P, O)
    if Opad != O:
        wo_cat = jnp.pad(wo_cat, ((0, 0), (0, Opad - O)))

    # --- cached absolute-position sin/cos tables ------------------------------
    sin_p, cos_p = _pos_tables(D, S)                             # [S, D2] each
    cos_big = jnp.tile(cos_p[:T], (Bt * H, 1))                   # [Bt*H*T, D2]
    sin_big = jnp.tile(sin_p[:T], (Bt * H, 1))
    sincos_T = jnp.concatenate([sin_p.T, cos_p.T], axis=0)       # [D, S]

    if matmul_dtype != jnp.float32:
        # pre-cast MXU-only constants once (element-wise math stays f32)
        wq_cat, wkv, wpos_d, wo_cat, sincos_T = (
            t.astype(matmul_dtype) for t in (wq_cat, wkv, wpos_d, wo_cat, sincos_T))

    kernel = functools.partial(moa_kernel, bt=Bt, n_heads=H, n_experts=E,
                               proj=P, matmul_dtype=matmul_dtype)
    out = pl.pallas_call(
        kernel,
        out_shape=jax.ShapeDtypeStruct((B * T, Opad), jnp.float32),
        grid=(B // Bt,),
        in_specs=[
            pl.BlockSpec((Bt * T, D), lambda g: (g, 0)),             # curr_state
            pl.BlockSpec((Bt * S, D), lambda g: (g, 0)),             # attend_to
            pl.BlockSpec((Bt * T, 2 * H * E), lambda g: (g, 0)),     # sel/gate pack
            pl.BlockSpec((Bt * H * T, D2), lambda g: (0, 0)),        # cos(w t) tiled
            pl.BlockSpec((Bt * H * T, D2), lambda g: (0, 0)),        # sin(w t) tiled
            pl.BlockSpec((D, S), lambda g: (0, 0)),                  # [sin_j; cos_j]
            pl.BlockSpec((D, E * P), lambda g: (0, 0)),              # data_to_q cat
            pl.BlockSpec((D, 2 * P), lambda g: (0, 0)),              # data_to_kv
            pl.BlockSpec((P, D), lambda g: (0, 0)),                  # pos_to_pk deint
            pl.BlockSpec((E * P, Opad), lambda g: (0, 0)),           # out_proj cat
        ],
        out_specs=pl.BlockSpec((Bt * T, Opad), lambda g: (g, 0)),
        scratch_shapes=[pltpu.VMEM((Bt * T, E * P), jnp.float32)],
        compiler_params=pltpu.CompilerParams(
            dimension_semantics=("parallel",),
            # v5e scoped default is only 16 MiB; raise toward ~96 MiB on v6e /
            # ~48-56 MiB on v7x for large S / larger batch blocks.
            vmem_limit_bytes=32 * 1024 * 1024),
    )(curr_state.reshape(B * T, D), attend_to.reshape(B * S, D), selw,
      cos_big, sin_big, sincos_T, wq_cat, wkv, wpos_d, wo_cat)

    out = out.reshape(B, T, Opad)
    return out[..., :O] if Opad != O else out


# ----------------------------------------------------------------------------
# Pure-JAX reference (mirrors the PyTorch forward, eval mode, mask=None)
# ----------------------------------------------------------------------------
def moa_reference(curr_state, attend_to, params, n_heads):
    B, T, D = curr_state.shape
    S = attend_to.shape[1]
    E, _, P = params["data_to_q"].shape
    scale = jnp.sqrt(params["scale"])

    sel_logits = curr_state @ params["sel_dst"].T
    sel_val, sel_idx = lax.top_k(sel_logits, n_heads)
    gate = jax.nn.sigmoid(sel_val)

    pemb = sinusoidal_pos_embedding(D, S)
    k_pos = pemb @ params["pos_to_pk"].T * scale               # [2S-1, P]
    kv = attend_to @ params["data_to_kv"]
    k = kv[..., :P] * scale
    v = kv[..., P:]

    t_idx = jnp.arange(T)[:, None]
    j_idx = jnp.arange(S)[None, :]
    rel = S - 1 + j_idx - t_idx                                # [T, S]

    total = jnp.zeros((B, T, params["out_proj"].shape[-1]), jnp.float32)
    for h in range(n_heads):
        idx = sel_idx[..., h]                                  # [B, T]
        Wq = params["data_to_q"][idx]                          # [B, T, D, P]
        q = jnp.einsum("btd,btdp->btp", curr_state, Wq) * scale
        full = jnp.einsum("btp,rp->btr", q, k_pos)             # [B, T, 2S-1]
        shifted = jnp.take_along_axis(
            full, jnp.broadcast_to(rel, (B, T, S)), axis=-1)   # [B, T, S]
        att = shifted + jnp.einsum("btp,bsp->bts", q, k)
        att = jax.nn.softmax(att, axis=-1)
        res = jnp.einsum("bts,bsp->btp", att, v)
        Wo = params["out_proj"][idx]                           # [B, T, P, O]
        total = total + jnp.einsum("btp,btpo->bto", res, Wo) * gate[..., h:h + 1]
    return total


if __name__ == "__main__":
    key = jax.random.PRNGKey(0)
    kp, kx, ka = jax.random.split(key, 3)

    B, T, D = 2, 8, 32          # batch, seq, state_size (=input=output size)
    n_heads, n_experts = 2, 4   # projection_size = 32 // 2 = 16

    params = init_params(kp, state_size=D, n_heads=n_heads, n_experts=n_experts)
    curr_state = jax.random.normal(kx, (B, T, D), jnp.float32)
    attend_to = jax.random.normal(ka, (B, T, D), jnp.float32)

    out = moa_forward(curr_state, attend_to, params, n_heads)
    out = jax.block_until_ready(out)

    ref = moa_reference(curr_state, attend_to, params, n_heads)
    assert out.shape == (B, T, D), out.shape
    # tolerance accounts for the approx EUP reciprocal in the softmax and the
    # (exact-in-real-arithmetic) trig decomposition of the relative-pos term.
    err = float(jnp.max(jnp.abs(out - ref)))
    assert jnp.allclose(out, ref, atol=5e-3, rtol=5e-3), err

    print("KERNEL_OK")
</pallas_src>

<mosaic_0001>
module attributes {stable_mosaic.version = 11 : i64} {
  func.func @moa_kernel(%arg0: i32, %arg1: memref<16x32xf32, #tpu.memory_space<vmem>>, %arg2: memref<16x32xf32, #tpu.memory_space<vmem>>, %arg3: memref<16x16xf32, #tpu.memory_space<vmem>>, %arg4: memref<32x16xf32, #tpu.memory_space<vmem>>, %arg5: memref<32x16xf32, #tpu.memory_space<vmem>>, %arg6: memref<32x8xf32, #tpu.memory_space<vmem>>, %arg7: memref<32x64xf32, #tpu.memory_space<vmem>>, %arg8: memref<32x32xf32, #tpu.memory_space<vmem>>, %arg9: memref<16x32xf32, #tpu.memory_space<vmem>>, %arg10: memref<64x128xf32, #tpu.memory_space<vmem>>, %arg11: memref<16x128xf32, #tpu.memory_space<vmem>>, %arg12: memref<16x64xf32, #tpu.memory_space<vmem>>) attributes {dimension_semantics = [#tpu.dimension_semantics<parallel>], iteration_bounds = array<i64: 1>, scalar_prefetch = 0 : i64, scratch_operands = 1 : i64, tpu.core_type = #tpu.core_type<tc>, window_params = [{transform_indices = @transform_0, window_bounds = array<i64: 16, 32>}, {transform_indices = @transform_1, window_bounds = array<i64: 16, 32>}, {transform_indices = @transform_2, window_bounds = array<i64: 16, 16>}, {pipeline_mode = #tpu.pipeline_mode<synchronous>, transform_indices = @transform_3, window_bounds = array<i64: 32, 16>}, {pipeline_mode = #tpu.pipeline_mode<synchronous>, transform_indices = @transform_4, window_bounds = array<i64: 32, 16>}, {pipeline_mode = #tpu.pipeline_mode<synchronous>, transform_indices = @transform_5, window_bounds = array<i64: 32, 8>}, {pipeline_mode = #tpu.pipeline_mode<synchronous>, transform_indices = @transform_6, window_bounds = array<i64: 32, 64>}, {pipeline_mode = #tpu.pipeline_mode<synchronous>, transform_indices = @transform_7, window_bounds = array<i64: 32, 32>}, {pipeline_mode = #tpu.pipeline_mode<synchronous>, transform_indices = @transform_8, window_bounds = array<i64: 16, 32>}, {pipeline_mode = #tpu.pipeline_mode<synchronous>, transform_indices = @transform_9, window_bounds = array<i64: 64, 128>}, {transform_indices = @transform_10, window_bounds = array<i64: 16, 128>}]} {
    %c0 = arith.constant 0 : index
    %c0_0 = arith.constant 0 : index
    %0 = vector.load %arg1[%c0, %c0_0] : memref<16x32xf32, #tpu.memory_space<vmem>>, vector<16x32xf32>
    %c0_1 = arith.constant 0 : index
    %c0_2 = arith.constant 0 : index
    %1 = vector.load %arg7[%c0_1, %c0_2] : memref<32x64xf32, #tpu.memory_space<vmem>>, vector<32x64xf32>
    %cst = arith.constant dense<0.000000e+00> : vector<16x64xf32>
    %2 = tpu.matmul %0, %1, %cst {dimension_numbers = #tpu.dot_dimension_numbers<[1], [0], [0], [1], [0, 0, 1, 1], [], []>} : vector<16x32xf32>, vector<32x64xf32>, vector<16x64xf32> -> vector<16x64xf32>
    %c0_3 = arith.constant 0 : index
    %c0_4 = arith.constant 0 : index
    %3 = vector.load %arg2[%c0_3, %c0_4] : memref<16x32xf32, #tpu.memory_space<vmem>>, vector<16x32xf32>
    %c0_5 = arith.constant 0 : index
    %c0_6 = arith.constant 0 : index
    %4 = vector.load %arg8[%c0_5, %c0_6] : memref<32x32xf32, #tpu.memory_space<vmem>>, vector<32x32xf32>
    %cst_7 = arith.constant dense<0.000000e+00> : vector<16x32xf32>
    %5 = tpu.matmul %3, %4, %cst_7 {dimension_numbers = #tpu.dot_dimension_numbers<[1], [0], [0], [1], [0, 0, 1, 1], [], []>} : vector<16x32xf32>, vector<32x32xf32>, vector<16x32xf32> -> vector<16x32xf32>
    %c0_8 = arith.constant 0 : index
    %c0_9 = arith.constant 0 : index
    %6 = vector.load %arg3[%c0_8, %c0_9] : memref<16x16xf32, #tpu.memory_space<vmem>>, vector<16x16xf32>
    %7 = vector.extract_strided_slice %2 {offsets = [0, 0], sizes = [8, 64], strides = [1, 1]} : vector<16x64xf32> to vector<8x64xf32>
    %8 = vector.extract_strided_slice %6 {offsets = [0, 0], sizes = [8, 4], strides = [1, 1]} : vector<16x16xf32> to vector<8x4xf32>
    %9 = vector.extract_strided_slice %8 {offsets = [0, 0], sizes = [8, 1], strides = [1, 1]} : vector<8x4xf32> to vector<8x1xf32>
    %10 = vector.extract_strided_slice %7 {offsets = [0, 0], sizes = [8, 16], strides = [1, 1]} : vector<8x64xf32> to vector<8x16xf32>
    %11 = vector.broadcast %9 : vector<8x1xf32> to vector<8x16xf32>
    %12 = arith.mulf %11, %10 : vector<8x16xf32>
    %13 = vector.extract_strided_slice %8 {offsets = [0, 1], sizes = [8, 1], strides = [1, 1]} : vector<8x4xf32> to vector<8x1xf32>
    %14 = vector.extract_strided_slice %7 {offsets = [0, 16], sizes = [8, 16], strides = [1, 1]} : vector<8x64xf32> to vector<8x16xf32>
    %15 = vector.broadcast %13 : vector<8x1xf32> to vector<8x16xf32>
    %16 = arith.mulf %15, %14 : vector<8x16xf32>
    %17 = arith.addf %12, %16 : vector<8x16xf32>
    %18 = vector.extract_strided_slice %8 {offsets = [0, 2], sizes = [8, 1], strides = [1, 1]} : vector<8x4xf32> to vector<8x1xf32>
    %19 = vector.extract_strided_slice %7 {offsets = [0, 32], sizes = [8, 16], strides = [1, 1]} : vector<8x64xf32> to vector<8x16xf32>
    %20 = vector.broadcast %18 : vector<8x1xf32> to vector<8x16xf32>
    %21 = arith.mulf %20, %19 : vector<8x16xf32>
    %22 = arith.addf %17, %21 : vector<8x16xf32>
    %23 = vector.extract_strided_slice %8 {offsets = [0, 3], sizes = [8, 1], strides = [1, 1]} : vector<8x4xf32> to vector<8x1xf32>
    %24 = vector.extract_strided_slice %7 {offsets = [0, 48], sizes = [8, 16], strides = [1, 1]} : vector<8x64xf32> to vector<8x16xf32>
    %25 = vector.broadcast %23 : vector<8x1xf32> to vector<8x16xf32>
    %26 = arith.mulf %25, %24 : vector<8x16xf32>
    %27 = arith.addf %22, %26 : vector<8x16xf32>
    %28 = vector.extract_strided_slice %6 {offsets = [0, 4], sizes = [8, 4], strides = [1, 1]} : vector<16x16xf32> to vector<8x4xf32>
    %29 = vector.extract_strided_slice %28 {offsets = [0, 0], sizes = [8, 1], strides = [1, 1]} : vector<8x4xf32> to vector<8x1xf32>
    %30 = vector.extract_strided_slice %7 {offsets = [0, 0], sizes = [8, 16], strides = [1, 1]} : vector<8x64xf32> to vector<8x16xf32>
    %31 = vector.broadcast %29 : vector<8x1xf32> to vector<8x16xf32>
    %32 = arith.mulf %31, %30 : vector<8x16xf32>
    %33 = vector.extract_strided_slice %28 {offsets = [0, 1], sizes = [8, 1], strides = [1, 1]} : vector<8x4xf32> to vector<8x1xf32>
    %34 = vector.extract_strided_slice %7 {offsets = [0, 16], sizes = [8, 16], strides = [1, 1]} : vector<8x64xf32> to vector<8x16xf32>
    %35 = vector.broadcast %33 : vector<8x1xf32> to vector<8x16xf32>
    %36 = arith.mulf %35, %34 : vector<8x16xf32>
    %37 = arith.addf %32, %36 : vector<8x16xf32>
    %38 = vector.extract_strided_slice %28 {offsets = [0, 2], sizes = [8, 1], strides = [1, 1]} : vector<8x4xf32> to vector<8x1xf32>
    %39 = vector.extract_strided_slice %7 {offsets = [0, 32], sizes = [8, 16], strides = [1, 1]} : vector<8x64xf32> to vector<8x16xf32>
    %40 = vector.broadcast %38 : vector<8x1xf32> to vector<8x16xf32>
    %41 = arith.mulf %40, %39 : vector<8x16xf32>
    %42 = arith.addf %37, %41 : vector<8x16xf32>
    %43 = vector.extract_strided_slice %28 {offsets = [0, 3], sizes = [8, 1], strides = [1, 1]} : vector<8x4xf32> to vector<8x1xf32>
    %44 = vector.extract_strided_slice %7 {offsets = [0, 48], sizes = [8, 16], strides = [1, 1]} : vector<8x64xf32> to vector<8x16xf32>
    %45 = vector.broadcast %43 : vector<8x1xf32> to vector<8x16xf32>
    %46 = arith.mulf %45, %44 : vector<8x16xf32>
    %47 = arith.addf %42, %46 : vector<8x16xf32>
    %48 = vector.extract_strided_slice %2 {offsets = [8, 0], sizes = [8, 64], strides = [1, 1]} : vector<16x64xf32> to vector<8x64xf32>
    %49 = vector.extract_strided_slice %6 {offsets = [8, 0], sizes = [8, 4], strides = [1, 1]} : vector<16x16xf32> to vector<8x4xf32>
    %50 = vector.extract_strided_slice %49 {offsets = [0, 0], sizes = [8, 1], strides = [1, 1]} : vector<8x4xf32> to vector<8x1xf32>
    %51 = vector.extract_strided_slice %48 {offsets = [0, 0], sizes = [8, 16], strides = [1, 1]} : vector<8x64xf32> to vector<8x16xf32>
    %52 = vector.broadcast %50 : vector<8x1xf32> to vector<8x16xf32>
    %53 = arith.mulf %52, %51 : vector<8x16xf32>
    %54 = vector.extract_strided_slice %49 {offsets = [0, 1], sizes = [8, 1], strides = [1, 1]} : vector<8x4xf32> to vector<8x1xf32>
    %55 = vector.extract_strided_slice %48 {offsets = [0, 16], sizes = [8, 16], strides = [1, 1]} : vector<8x64xf32> to vector<8x16xf32>
    %56 = vector.broadcast %54 : vector<8x1xf32> to vector<8x16xf32>
    %57 = arith.mulf %56, %55 : vector<8x16xf32>
    %58 = arith.addf %53, %57 : vector<8x16xf32>
    %59 = vector.extract_strided_slice %49 {offsets = [0, 2], sizes = [8, 1], strides = [1, 1]} : vector<8x4xf32> to vector<8x1xf32>
    %60 = vector.extract_strided_slice %48 {offsets = [0, 32], sizes = [8, 16], strides = [1, 1]} : vector<8x64xf32> to vector<8x16xf32>
    %61 = vector.broadcast %59 : vector<8x1xf32> to vector<8x16xf32>
    %62 = arith.mulf %61, %60 : vector<8x16xf32>
    %63 = arith.addf %58, %62 : vector<8x16xf32>
    %64 = vector.extract_strided_slice %49 {offsets = [0, 3], sizes = [8, 1], strides = [1, 1]} : vector<8x4xf32> to vector<8x1xf32>
    %65 = vector.extract_strided_slice %48 {offsets = [0, 48], sizes = [8, 16], strides = [1, 1]} : vector<8x64xf32> to vector<8x16xf32>
    %66 = vector.broadcast %64 : vector<8x1xf32> to vector<8x16xf32>
    %67 = arith.mulf %66, %65 : vector<8x16xf32>
    %68 = arith.addf %63, %67 : vector<8x16xf32>
    %69 = vector.extract_strided_slice %6 {offsets = [8, 4], sizes = [8, 4], strides = [1, 1]} : vector<16x16xf32> to vector<8x4xf32>
    %70 = vector.extract_strided_slice %69 {offsets = [0, 0], sizes = [8, 1], strides = [1, 1]} : vector<8x4xf32> to vector<8x1xf32>
    %71 = vector.extract_strided_slice %48 {offsets = [0, 0], sizes = [8, 16], strides = [1, 1]} : vector<8x64xf32> to vector<8x16xf32>
    %72 = vector.broadcast %70 : vector<8x1xf32> to vector<8x16xf32>
    %73 = arith.mulf %72, %71 : vector<8x16xf32>
    %74 = vector.extract_strided_slice %69 {offsets = [0, 1], sizes = [8, 1], strides = [1, 1]} : vector<8x4xf32> to vector<8x1xf32>
    %75 = vector.extract_strided_slice %48 {offsets = [0, 16], sizes = [8, 16], strides = [1, 1]} : vector<8x64xf32> to vector<8x16xf32>
    %76 = vector.broadcast %74 : vector<8x1xf32> to vector<8x16xf32>
    %77 = arith.mulf %76, %75 : vector<8x16xf32>
    %78 = arith.addf %73, %77 : vector<8x16xf32>
    %79 = vector.extract_strided_slice %69 {offsets = [0, 2], sizes = [8, 1], strides = [1, 1]} : vector<8x4xf32> to vector<8x1xf32>
    %80 = vector.extract_strided_slice %48 {offsets = [0, 32], sizes = [8, 16], strides = [1, 1]} : vector<8x64xf32> to vector<8x16xf32>
    %81 = vector.broadcast %79 : vector<8x1xf32> to vector<8x16xf32>
    %82 = arith.mulf %81, %80 : vector<8x16xf32>
    %83 = arith.addf %78, %82 : vector<8x16xf32>
    %84 = vector.extract_strided_slice %69 {offsets = [0, 3], sizes = [8, 1], strides = [1, 1]} : vector<8x4xf32> to vector<8x1xf32>
    %85 = vector.extract_strided_slice %48 {offsets = [0, 48], sizes = [8, 16], strides = [1, 1]} : vector<8x64xf32> to vector<8x16xf32>
    %86 = vector.broadcast %84 : vector<8x1xf32> to vector<8x16xf32>
    %87 = arith.mulf %86, %85 : vector<8x16xf32>
    %88 = arith.addf %83, %87 : vector<8x16xf32>
    %89 = tpu.concatenate %27, %47, %68, %88 in 0 : vector<8x16xf32>, vector<8x16xf32>, vector<8x16xf32>, vector<8x16xf32> -> vector<32x16xf32>
    %c0_10 = arith.constant 0 : index
    %c0_11 = arith.constant 0 : index
    %90 = vector.load %arg9[%c0_10, %c0_11] : memref<16x32xf32, #tpu.memory_space<vmem>>, vector<16x32xf32>
    %cst_12 = arith.constant dense<0.000000e+00> : vector<32x32xf32>
    %91 = tpu.matmul %89, %90, %cst_12 {dimension_numbers = #tpu.dot_dimension_numbers<[1], [0], [0], [1], [0, 0, 1, 1], [], []>} : vector<32x16xf32>, vector<16x32xf32>, vector<32x32xf32> -> vector<32x32xf32>
    %92 = vector.extract_strided_slice %91 {offsets = [0, 0], sizes = [32, 16], strides = [1, 1]} : vector<32x32xf32> to vector<32x16xf32>
    %93 = vector.extract_strided_slice %91 {offsets = [0, 16], sizes = [32, 16], strides = [1, 1]} : vector<32x32xf32> to vector<32x16xf32>
    %c0_13 = arith.constant 0 : index
    %c0_14 = arith.constant 0 : index
    %94 = vector.load %arg4[%c0_13, %c0_14] : memref<32x16xf32, #tpu.memory_space<vmem>>, vector<32x16xf32>
    %c0_15 = arith.constant 0 : index
    %c0_16 = arith.constant 0 : index
    %95 = vector.load %arg5[%c0_15, %c0_16] : memref<32x16xf32, #tpu.memory_space<vmem>>, vector<32x16xf32>
    %96 = arith.mulf %92, %94 : vector<32x16xf32>
    %97 = arith.mulf %93, %95 : vector<32x16xf32>
    %98 = arith.addf %96, %97 : vector<32x16xf32>
    %99 = arith.mulf %93, %94 : vector<32x16xf32>
    %100 = arith.mulf %92, %95 : vector<32x16xf32>
    %101 = arith.subf %99, %100 : vector<32x16xf32>
    %102 = tpu.concatenate %98, %101 in 1 : vector<32x16xf32>, vector<32x16xf32> -> vector<32x32xf32>
    %c0_17 = arith.constant 0 : index
    %c0_18 = arith.constant 0 : index
    %103 = vector.load %arg6[%c0_17, %c0_18] : memref<32x8xf32, #tpu.memory_space<vmem>>, vector<32x8xf32>
    %cst_19 = arith.constant dense<0.000000e+00> : vector<32x8xf32>
    %104 = tpu.matmul %102, %103, %cst_19 {dimension_numbers = #tpu.dot_dimension_numbers<[1], [0], [0], [1], [0, 0, 1, 1], [], []>} : vector<32x32xf32>, vector<32x8xf32>, vector<32x8xf32> -> vector<32x8xf32>
    %105 = vector.extract_strided_slice %5 {offsets = [0, 0], sizes = [8, 16], strides = [1, 1]} : vector<16x32xf32> to vector<8x16xf32>
    %106 = vector.extract_strided_slice %5 {offsets = [0, 16], sizes = [8, 16], strides = [1, 1]} : vector<16x32xf32> to vector<8x16xf32>
    %107 = vector.extract_strided_slice %89 {offsets = [0, 0], sizes = [16, 16], strides = [1, 1]} : vector<32x16xf32> to vector<16x16xf32>
    %108 = vector.extract_strided_slice %104 {offsets = [0, 0], sizes = [16, 8], strides = [1, 1]} : vector<32x8xf32> to vector<16x8xf32>
    %cst_20 = arith.constant dense<0.000000e+00> : vector<16x8xf32>
    %109 = tpu.matmul %107, %105, %cst_20 {dimension_numbers = #tpu.dot_dimension_numbers<[1], [1], [0], [0], [0, 0, 1, 0], [], []>} : vector<16x16xf32>, vector<8x16xf32>, vector<16x8xf32> -> vector<16x8xf32>
    %110 = arith.addf %108, %109 : vector<16x8xf32>
    %cst_21 = arith.constant dense<0xFF800000> : vector<16xf32>
    %111 = vector.multi_reduction <maximumf>, %110, %cst_21 [1] : vector<16x8xf32> to vector<16xf32>
    %112 = vector.shape_cast %111 : vector<16xf32> to vector<16x1xf32>
    %113 = vector.broadcast %112 : vector<16x1xf32> to vector<16x8xf32>
    %114 = arith.subf %110, %113 : vector<16x8xf32>
    %115 = math.exp %114 : vector<16x8xf32>
    %cst_22 = arith.constant dense<0.000000e+00> : vector<16xf32>
    %116 = vector.multi_reduction <add>, %115, %cst_22 [1] : vector<16x8xf32> to vector<16xf32>
    %117 = vector.shape_cast %116 : vector<16xf32> to vector<16x1xf32>
    %118 = tpu.reciprocal %117 {approx = true} : vector<16x1xf32> -> vector<16x1xf32>
    %119 = vector.broadcast %118 : vector<16x1xf32> to vector<16x8xf32>
    %120 = arith.mulf %115, %119 : vector<16x8xf32>
    %cst_23 = arith.constant dense<0.000000e+00> : vector<16x16xf32>
    %121 = tpu.matmul %120, %106, %cst_23 {dimension_numbers = #tpu.dot_dimension_numbers<[1], [0], [0], [1], [0, 0, 1, 1], [], []>} : vector<16x8xf32>, vector<8x16xf32>, vector<16x16xf32> -> vector<16x16xf32>
    %122 = vector.extract_strided_slice %6 {offsets = [0, 8], sizes = [8, 1], strides = [1, 1]} : vector<16x16xf32> to vector<8x1xf32>
    %123 = vector.extract_strided_slice %121 {offsets = [0, 0], sizes = [8, 16], strides = [1, 1]} : vector<16x16xf32> to vector<8x16xf32>
    %124 = vector.broadcast %122 : vector<8x1xf32> to vector<8x16xf32>
    %125 = arith.mulf %124, %123 : vector<8x16xf32>
    %126 = vector.extract_strided_slice %6 {offsets = [0, 12], sizes = [8, 1], strides = [1, 1]} : vector<16x16xf32> to vector<8x1xf32>
    %127 = vector.extract_strided_slice %121 {offsets = [8, 0], sizes = [8, 16], strides = [1, 1]} : vector<16x16xf32> to vector<8x16xf32>
    %128 = vector.broadcast %126 : vector<8x1xf32> to vector<8x16xf32>
    %129 = arith.mulf %128, %127 : vector<8x16xf32>
    %130 = arith.addf %125, %129 : vector<8x16xf32>
    %131 = vector.extract_strided_slice %6 {offsets = [0, 9], sizes = [8, 1], strides = [1, 1]} : vector<16x16xf32> to vector<8x1xf32>
    %132 = vector.extract_strided_slice %121 {offsets = [0, 0], sizes = [8, 16], strides = [1, 1]} : vector<16x16xf32> to vector<8x16xf32>
    %133 = vector.broadcast %131 : vector<8x1xf32> to vector<8x16xf32>
    %134 = arith.mulf %133, %132 : vector<8x16xf32>
    %135 = vector.extract_strided_slice %6 {offsets = [0, 13], sizes = [8, 1], strides = [1, 1]} : vector<16x16xf32> to vector<8x1xf32>
    %136 = vector.extract_strided_slice %121 {offsets = [8, 0], sizes = [8, 16], strides = [1, 1]} : vector<16x16xf32> to vector<8x16xf32>
    %137 = vector.broadcast %135 : vector<8x1xf32> to vector<8x16xf32>
    %138 = arith.mulf %137, %136 : vector<8x16xf32>
    %139 = arith.addf %134, %138 : vector<8x16xf32>
    %140 = vector.extract_strided_slice %6 {offsets = [0, 10], sizes = [8, 1], strides = [1, 1]} : vector<16x16xf32> to vector<8x1xf32>
    %141 = vector.extract_strided_slice %121 {offsets = [0, 0], sizes = [8, 16], strides = [1, 1]} : vector<16x16xf32> to vector<8x16xf32>
    %142 = vector.broadcast %140 : vector<8x1xf32> to vector<8x16xf32>
    %143 = arith.mulf %142, %141 : vector<8x16xf32>
    %144 = vector.extract_strided_slice %6 {offsets = [0, 14], sizes = [8, 1], strides = [1, 1]} : vector<16x16xf32> to vector<8x1xf32>
    %145 = vector.extract_strided_slice %121 {offsets = [8, 0], sizes = [8, 16], strides = [1, 1]} : vector<16x16xf32> to vector<8x16xf32>
    %146 = vector.broadcast %144 : vector<8x1xf32> to vector<8x16xf32>
    %147 = arith.mulf %146, %145 : vector<8x16xf32>
    %148 = arith.addf %143, %147 : vector<8x16xf32>
    %149 = vector.extract_strided_slice %6 {offsets = [0, 11], sizes = [8, 1], strides = [1, 1]} : vector<16x16xf32> to vector<8x1xf32>
    %150 = vector.extract_strided_slice %121 {offsets = [0, 0], sizes = [8, 16], strides = [1, 1]} : vector<16x16xf32> to vector<8x16xf32>
    %151 = vector.broadcast %149 : vector<8x1xf32> to vector<8x16xf32>
    %152 = arith.mulf %151, %150 : vector<8x16xf32>
    %153 = vector.extract_strided_slice %6 {offsets = [0, 15], sizes = [8, 1], strides = [1, 1]} : vector<16x16xf32> to vector<8x1xf32>
    %154 = vector.extract_strided_slice %121 {offsets = [8, 0], sizes = [8, 16], strides = [1, 1]} : vector<16x16xf32> to vector<8x16xf32>
    %155 = vector.broadcast %153 : vector<8x1xf32> to vector<8x16xf32>
    %156 = arith.mulf %155, %154 : vector<8x16xf32>
    %157 = arith.addf %152, %156 : vector<8x16xf32>
    %158 = tpu.concatenate %130, %139, %148, %157 in 1 : vector<8x16xf32>, vector<8x16xf32>, vector<8x16xf32>, vector<8x16xf32> -> vector<8x64xf32>
    %c0_24 = arith.constant 0 : index
    %c0_25 = arith.constant 0 : index
    %159 = vector.load %arg12[%c0_24, %c0_25] : memref<16x64xf32, #tpu.memory_space<vmem>>, vector<8x64xf32>
    tpu.vector_store %arg12[%c0_24, %c0_25], %158 {strides = array<i32>} : memref<16x64xf32, #tpu.memory_space<vmem>>, vector<8x64xf32>,
    %160 = vector.extract_strided_slice %5 {offsets = [8, 0], sizes = [8, 16], strides = [1, 1]} : vector<16x32xf32> to vector<8x16xf32>
    %161 = vector.extract_strided_slice %5 {offsets = [8, 16], sizes = [8, 16], strides = [1, 1]} : vector<16x32xf32> to vector<8x16xf32>
    %162 = vector.extract_strided_slice %89 {offsets = [16, 0], sizes = [16, 16], strides = [1, 1]} : vector<32x16xf32> to vector<16x16xf32>
    %163 = vector.extract_strided_slice %104 {offsets = [16, 0], sizes = [16, 8], strides = [1, 1]} : vector<32x8xf32> to vector<16x8xf32>
    %cst_26 = arith.constant dense<0.000000e+00> : vector<16x8xf32>
    %164 = tpu.matmul %162, %160, %cst_26 {dimension_numbers = #tpu.dot_dimension_numbers<[1], [1], [0], [0], [0, 0, 1, 0], [], []>} : vector<16x16xf32>, vector<8x16xf32>, vector<16x8xf32> -> vector<16x8xf32>
    %165 = arith.addf %163, %164 : vector<16x8xf32>
    %cst_27 = arith.constant dense<0xFF800000> : vector<16xf32>
    %166 = vector.multi_reduction <maximumf>, %165, %cst_27 [1] : vector<16x8xf32> to vector<16xf32>
    %167 = vector.shape_cast %166 : vector<16xf32> to vector<16x1xf32>
    %168 = vector.broadcast %167 : vector<16x1xf32> to vector<16x8xf32>
    %169 = arith.subf %165, %168 : vector<16x8xf32>
    %170 = math.exp %169 : vector<16x8xf32>
    %cst_28 = arith.constant dense<0.000000e+00> : vector<16xf32>
    %171 = vector.multi_reduction <add>, %170, %cst_28 [1] : vector<16x8xf32> to vector<16xf32>
    %172 = vector.shape_cast %171 : vector<16xf32> to vector<16x1xf32>
    %173 = tpu.reciprocal %172 {approx = true} : vector<16x1xf32> -> vector<16x1xf32>
    %174 = vector.broadcast %173 : vector<16x1xf32> to vector<16x8xf32>
    %175 = arith.mulf %170, %174 : vector<16x8xf32>
    %cst_29 = arith.constant dense<0.000000e+00> : vector<16x16xf32>
    %176 = tpu.matmul %175, %161, %cst_29 {dimension_numbers = #tpu.dot_dimension_numbers<[1], [0], [0], [1], [0, 0, 1, 1], [], []>} : vector<16x8xf32>, vector<8x16xf32>, vector<16x16xf32> -> vector<16x16xf32>
    %177 = vector.extract_strided_slice %6 {offsets = [8, 8], sizes = [8, 1], strides = [1, 1]} : vector<16x16xf32> to vector<8x1xf32>
    %178 = vector.extract_strided_slice %176 {offsets = [0, 0], sizes = [8, 16], strides = [1, 1]} : vector<16x16xf32> to vector<8x16xf32>
    %179 = vector.broadcast %177 : vector<8x1xf32> to vector<8x16xf32>
    %180 = arith.mulf %179, %178 : vector<8x16xf32>
    %181 = vector.extract_strided_slice %6 {offsets = [8, 12], sizes = [8, 1], strides = [1, 1]} : vector<16x16xf32> to vector<8x1xf32>
    %182 = vector.extract_strided_slice %176 {offsets = [8, 0], sizes = [8, 16], strides = [1, 1]} : vector<16x16xf32> to vector<8x16xf32>
    %183 = vector.broadcast %181 : vector<8x1xf32> to vector<8x16xf32>
    %184 = arith.mulf %183, %182 : vector<8x16xf32>
    %185 = arith.addf %180, %184 : vector<8x16xf32>
    %186 = vector.extract_strided_slice %6 {offsets = [8, 9], sizes = [8, 1], strides = [1, 1]} : vector<16x16xf32> to vector<8x1xf32>
    %187 = vector.extract_strided_slice %176 {offsets = [0, 0], sizes = [8, 16], strides = [1, 1]} : vector<16x16xf32> to vector<8x16xf32>
    %188 = vector.broadcast %186 : vector<8x1xf32> to vector<8x16xf32>
    %189 = arith.mulf %188, %187 : vector<8x16xf32>
    %190 = vector.extract_strided_slice %6 {offsets = [8, 13], sizes = [8, 1], strides = [1, 1]} : vector<16x16xf32> to vector<8x1xf32>
    %191 = vector.extract_strided_slice %176 {offsets = [8, 0], sizes = [8, 16], strides = [1, 1]} : vector<16x16xf32> to vector<8x16xf32>
    %192 = vector.broadcast %190 : vector<8x1xf32> to vector<8x16xf32>
    %193 = arith.mulf %192, %191 : vector<8x16xf32>
    %194 = arith.addf %189, %193 : vector<8x16xf32>
    %195 = vector.extract_strided_slice %6 {offsets = [8, 10], sizes = [8, 1], strides = [1, 1]} : vector<16x16xf32> to vector<8x1xf32>
    %196 = vector.extract_strided_slice %176 {offsets = [0, 0], sizes = [8, 16], strides = [1, 1]} : vector<16x16xf32> to vector<8x16xf32>
    %197 = vector.broadcast %195 : vector<8x1xf32> to vector<8x16xf32>
    %198 = arith.mulf %197, %196 : vector<8x16xf32>
    %199 = vector.extract_strided_slice %6 {offsets = [8, 14], sizes = [8, 1], strides = [1, 1]} : vector<16x16xf32> to vector<8x1xf32>
    %200 = vector.extract_strided_slice %176 {offsets = [8, 0], sizes = [8, 16], strides = [1, 1]} : vector<16x16xf32> to vector<8x16xf32>
    %201 = vector.broadcast %199 : vector<8x1xf32> to vector<8x16xf32>
    %202 = arith.mulf %201, %200 : vector<8x16xf32>
    %203 = arith.addf %198, %202 : vector<8x16xf32>
    %204 = vector.extract_strided_slice %6 {offsets = [8, 11], sizes = [8, 1], strides = [1, 1]} : vector<16x16xf32> to vector<8x1xf32>
    %205 = vector.extract_strided_slice %176 {offsets = [0, 0], sizes = [8, 16], strides = [1, 1]} : vector<16x16xf32> to vector<8x16xf32>
    %206 = vector.broadcast %204 : vector<8x1xf32> to vector<8x16xf32>
    %207 = arith.mulf %206, %205 : vector<8x16xf32>
    %208 = vector.extract_strided_slice %6 {offsets = [8, 15], sizes = [8, 1], strides = [1, 1]} : vector<16x16xf32> to vector<8x1xf32>
    %209 = vector.extract_strided_slice %176 {offsets = [8, 0], sizes = [8, 16], strides = [1, 1]} : vector<16x16xf32> to vector<8x16xf32>
    %210 = vector.broadcast %208 : vector<8x1xf32> to vector<8x16xf32>
    %211 = arith.mulf %210, %209 : vector<8x16xf32>
    %212 = arith.addf %207, %211 : vector<8x16xf32>
    %213 = tpu.concatenate %185, %194, %203, %212 in 1 : vector<8x16xf32>, vector<8x16xf32>, vector<8x16xf32>, vector<8x16xf32> -> vector<8x64xf32>
    %c8 = arith.constant 8 : index
    %c0_30 = arith.constant 0 : index
    %214 = vector.load %arg12[%c8, %c0_30] : memref<16x64xf32, #tpu.memory_space<vmem>>, vector<8x64xf32>
    tpu.vector_store %arg12[%c8, %c0_30], %213 {strides = array<i32>} : memref<16x64xf32, #tpu.memory_space<vmem>>, vector<8x64xf32>,
    %c0_31 = arith.constant 0 : index
    %c0_32 = arith.constant 0 : index
    %215 = vector.load %arg12[%c0_31, %c0_32] : memref<16x64xf32, #tpu.memory_space<vmem>>, vector<16x64xf32>
    %c0_33 = arith.constant 0 : index
    %c0_34 = arith.constant 0 : index
    %216 = vector.load %arg10[%c0_33, %c0_34] : memref<64x128xf32, #tpu.memory_space<vmem>>, vector<64x128xf32>
    %cst_35 = arith.constant dense<0.000000e+00> : vector<16x128xf32>
    %217 = tpu.matmul %215, %216, %cst_35 {dimension_numbers = #tpu.dot_dimension_numbers<[1], [0], [0], [1], [0, 0, 1, 1], [], []>} : vector<16x64xf32>, vector<64x128xf32>, vector<16x128xf32> -> vector<16x128xf32>
    %c0_36 = arith.constant 0 : index
    %c0_37 = arith.constant 0 : index
    %218 = vector.load %arg11[%c0_36, %c0_37] : memref<16x128xf32, #tpu.memory_space<vmem>>, vector<16x128xf32>
    tpu.vector_store %arg11[%c0_36, %c0_37], %217 {strides = array<i32>} : memref<16x128xf32, #tpu.memory_space<vmem>>, vector<16x128xf32>,
    return
  }
  func.func @transform_0(%arg0: i32) -> (i32, i32) {
    %c0_i32 = arith.constant 0 : i32
    %c0_i32_0 = arith.constant 0 : i32
    return %arg0, %c0_i32 : i32, i32
  }
  func.func @transform_1(%arg0: i32) -> (i32, i32) {
    %c0_i32 = arith.constant 0 : i32
    %c0_i32_0 = arith.constant 0 : i32
    return %arg0, %c0_i32 : i32, i32
  }
  func.func @transform_2(%arg0: i32) -> (i32, i32) {
    %c0_i32 = arith.constant 0 : i32
    %c0_i32_0 = arith.constant 0 : i32
    return %arg0, %c0_i32 : i32, i32
  }
  func.func @transform_3(%arg0: i32) -> (i32, i32) {
    %c0_i32 = arith.constant 0 : i32
    %c0_i32_0 = arith.constant 0 : i32
    %c0_i32_1 = arith.constant 0 : i32
    return %c0_i32, %c0_i32_0 : i32, i32
  }
  func.func @transform_4(%arg0: i32) -> (i32, i32) {
    %c0_i32 = arith.constant 0 : i32
    %c0_i32_0 = arith.constant 0 : i32
    %c0_i32_1 = arith.constant 0 : i32
    return %c0_i32, %c0_i32_0 : i32, i32
  }
  func.func @transform_5(%arg0: i32) -> (i32, i32) {
    %c0_i32 = arith.constant 0 : i32
    %c0_i32_0 = arith.constant 0 : i32
    %c0_i32_1 = arith.constant 0 : i32
    return %c0_i32, %c0_i32_0 : i32, i32
  }
  func.func @transform_6(%arg0: i32) -> (i32, i32) {
    %c0_i32 = arith.constant 0 : i32
    %c0_i32_0 = arith.constant 0 : i32
    %c0_i32_1 = arith.constant 0 : i32
    return %c0_i32, %c0_i32_0 : i32, i32
  }
  func.func @transform_7(%arg0: i32) -> (i32, i32) {
    %c0_i32 = arith.constant 0 : i32
    %c0_i32_0 = arith.constant 0 : i32
    %c0_i32_1 = arith.constant 0 : i32
    return %c0_i32, %c0_i32_0 : i32, i32
  }
  func.func @transform_8(%arg0: i32) -> (i32, i32) {
    %c0_i32 = arith.constant 0 : i32
    %c0_i32_0 = arith.constant 0 : i32
    %c0_i32_1 = arith.constant 0 : i32
    return %c0_i32, %c0_i32_0 : i32, i32
  }
  func.func @transform_9(%arg0: i32) -> (i32, i32) {
    %c0_i32 = arith.constant 0 : i32
    %c0_i32_0 = arith.constant 0 : i32
    %c0_i32_1 = arith.constant 0 : i32
    return %c0_i32, %c0_i32_0 : i32, i32
  }
  func.func @transform_10(%arg0: i32) -> (i32, i32) {
    %c0_i32 = arith.constant 0 : i32
    %c0_i32_0 = arith.constant 0 : i32
    return %arg0, %c0_i32 : i32, i32
  }
}

</mosaic_0001>

<bundles_post_ra>
// kernel: tpu_custom_call.1
= control target key start
LH: loop header
LB: loop body
LE: loop exit
PB: predicated region body
PF: predicated region fallthrough
CT: control target
= control target key end

     0   :  { %15 = vsyncpa [#allocation4], 0  ;;  %s1438_s0 = inlined_call_operand.vmem [shape: f32[16,32], index: 0, kind: input, shape index: {}]   ;;  %s1439_s1 = inlined_call_operand.hbm [shape: f32[16,32], index: 1, kind: input, shape index: {}]   ;;  %s1440_s2 = inlined_call_operand.hbm [shape: f32[16,16], index: 2, kind: input, shape index: {}]   ;;  %s1441_s3 = inlined_call_operand.vmem [shape: f32[32,16], index: 3, kind: input, shape index: {}]   ;;  %s1442_s4 = inlined_call_operand.vmem [shape: f32[32,16], index: 4, kind: input, shape index: {}]   ;;  %s1443_s5 = inlined_call_operand.vmem [shape: f32[32,8], index: 5, kind: input, shape index: {}]   ;;  %s1444_s6 = inlined_call_operand.vmem [shape: f32[32,64], index: 6, kind: input, shape index: {}]   ;;  %s1445_s7 = inlined_call_operand.hbm [shape: f32[32,32], index: 7, kind: input, shape index: {}]   ;;  %s1446_s8 = inlined_call_operand.hbm [shape: f32[16,32], index: 8, kind: input, shape index: {}]   ;;  %s1447_s9 = inlined_call_operand.vmem [shape: f32[64,128], index: 9, kind: input, shape index: {}]   ;;  %s1448_s10 = inlined_call_operand.hbm [shape: f32[16,128], index: 10, kind: output, shape index: {}]  }
   0x1   :  { %16 = vsyncpa [#allocation7], 0 }
   0x2   :  { %17 = vsyncpa [#allocation10], 0 }
   0x3   :  { %18 = vsyncpa [#allocation5], 0  ;;  %s38_s15 = sshll.u32 %s1440_s2, 4  ;;  %s1082_s16 = smov [#allocation6]   ;;  %s39_s15 = int_to_ptr.hbm [resolvable:$true] %s38_s15 }
   0x4   :  { %s40_s17 = sshll.u32 %s1082_s16, 4  ;;  %s25_s20 = sshll.u32 %s1439_s1, 4  ;;  %s41_s17 = int_to_ptr.vmem [resolvable:$true] %s40_s17  ;;  %s26_s20 = int_to_ptr.hbm [resolvable:$true] %s25_s20 }
   0x5   :  { %s1083_s21 = smov 128   ;;  %s1084_s22 = smov 8  }
   0x6   :  { %46 = dma.hbm_to_vmem [thread:$0]  %s39_s15, 256, %s41_s17, [#allocation7], %s1083_s21, %s1083_s21, %s1084_s22  }
   0x7   :  { %s1085_s23 = smov [#allocation3]   ;;  %s59_s2 = sshll.u32 %s1445_s7, 4  ;;  %s60_s2 = int_to_ptr.hbm [resolvable:$true] %s59_s2 }
   0x8   :  { %s27_s24 = sshll.u32 %s1085_s23, 4  ;;  %s72_s28 = sshll.u32 %s1446_s8, 4  ;;  %s28_s24 = int_to_ptr.vmem [resolvable:$true] %s27_s24  ;;  %s73_s28 = int_to_ptr.hbm [resolvable:$true] %s72_s28 }
   0x9   :  { %33 = dma.hbm_to_vmem [thread:$0]  %s26_s20, 256, %s28_s24, [#allocation4], %s1083_s21, %s1083_s21, %s1084_s22  }
   0xa   :  { %s1086_s29 = smov [#allocation8]   ;;  %s1087_s11 = smov [#allocation9]  }
   0xb   :  { %s61_s30 = sshll.u32 %s1086_s29, 4  ;;  %s74_s7 = sshll.u32 %s1087_s11, 4  ;;  %s62_s30 = int_to_ptr.vmem [resolvable:$true] %s61_s30  ;;  %s75_s7 = int_to_ptr.vmem [resolvable:$true] %s74_s7 }
   0xc   :  { %67 = dma.hbm_to_vmem [thread:$0]  %s60_s2, 512, %s62_s30, [#allocation7], %s1083_s21, %s1083_s21, %s1084_s22  }
   0xd   :  { %80 = dma.hbm_to_vmem [thread:$0]  %s73_s28, 256, %s75_s7, [#allocation10], %s1083_s21, %s1083_s21, %s1084_s22  }
   0xe   :  { %1074 = dma.done.wait [#allocation4], 256  }
   0xf   :  { %1075 = vsyncadd [#allocation4], 4294967040 }
  0x10   :  { %1076 = dma.done.wait [#allocation7], 768  }
  0x11   :  { %1077 = vsyncadd [#allocation7], 4294966528 }
  0x12   :  { %1078 = dma.done.wait [#allocation10], 256  }
  0x13   :  { %1079 = vsyncadd [#allocation10], 4294967040  ;;  %v1088_v0 = vmov 1   ;;  %v1089_v1 = vmov 3   ;;  %v1090_v2 = vmov 6   ;;  %v1190_v3 = vld [vmem:[#allocation6] sm:$0xff] }
  0x14   :  { %909 = vset.pattern.permute.xlu0 %v1088_v0  ;;  %911 = vset.pattern.permute.xlu1 %v1089_v1  ;;  %v104_v4 = vld [vmem:[%s1444_s6 + $0x18] sm:$0xff]  ;;  %v103_v5 = vld [vmem:[%s1444_s6 + $0x10] sm:$0xff]  ;;  %v102_v6 = vld [vmem:[%s1444_s6 + $0x8] sm:$0xff]  ;;  %vm105_vm0 = vcmask 261120   ;;  %v1091_v10 = vmov 2   ;;  %v1092_v11 = vmov 5  }
  0x15   :  { %913 = vset.pattern.permute.xlu2 %v1090_v2  ;;  %179 = vperm.xlu0 %909, %v1190_v3   ;;  %v101_v7 = vld [vmem:[%s1444_s6] sm:$0xff]  ;;  %v100_v9 = vld [vmem:[%s1438_s0 + $0x8] sm:$0xff]  ;;  %v1093_v12 = vmov 7   ;;  %v1094_v14 = vmov 4   ;;  %v1095_v15 = vmov 0   ;;  %v138_v18 = vld [vmem:[#allocation8 + $0x8] sm:$0xff] }
  0x16   :  { %124 = vmatpush.msra.mxu0 %v104_v4  ;;  %876 = vmatpush.msra.mxu3 %v104_v4  ;;  %v99_v8 = vld [vmem:[%s1438_s0] sm:$0xff]  ;;  %v1218_v13 = vld [vmem:[#allocation6 + $0x8] sm:$0xff]  ;;  %v137_v19 = vld [vmem:[#allocation8] sm:$0xff]  ;;  %s1096_s0 = smov 80   ;;  %s1097_s6 = smov 96   ;;  %vm316_vm1 = vcmask 130048  }
  0x17   :  { %199 = vperm.xlu1 %911, %v1190_v3   ;;  %224 = vperm.xlu2 %913, %v1190_v3   ;;  %v140_v16 = vld [vmem:[#allocation8 + $0x18] sm:$0xff]  ;;  %v139_v17 = vld [vmem:[#allocation8 + $0x10] sm:$0xff]  ;;  %v135_v20 = vld [vmem:[#allocation3] sm:$0xff]  ;;  %s1098_s25 = smov 112   ;;  %s1099_s1 = smov 16   ;;  %vm531_vm2 = vcmask 64512  }
  0x18   :  { %125 = vmatpush.msra.mxu0 %v103_v5  ;;  %877 = vmatpush.msra.mxu3 %v103_v5  ;;  %v136_v25 = vld [vmem:[#allocation3 + $0x8] sm:$0xff]  ;;  %v314_v50 = vld [vmem:[#allocation9] sm:$0xff]  ;;  %v362_v51 = vld [vmem:[%s1442_s4] sm:$0xff]  ;;  %vm644_vm3 = vcmask 392192   ;;  %vm646_vm4 = vcmask 523264   ;;  %s837_s19 = sshll.u32 %s1448_s10, 4  ;;  %s838_s19 = int_to_ptr.hbm [resolvable:$true] %s837_s19 }
  0x19   :  { %159 = vmatpush.msra.mxu1 %v140_v16  ;;  %v315_v49 = vld [vmem:[#allocation9 + $0x8] sm:$0xff]  ;;  %v363_v62 = vld [vmem:[%s1442_s4 + $0x8] sm:$0xff] }
  0x1a   :  { %126 = vmatpush.msra.mxu0 %v102_v6  ;;  %878 = vmatpush.msra.mxu3 %v102_v6 }
  0x1b   :  { %160 = vmatpush.msra.mxu1 %v139_v17  ;;  %343 = vmatpush.msra.mxu2 %v315_v49  ;;  %v459_v49 = vld [vmem:[%s1443_s5 + $0x8] sm:$0xff] }
  0x1c   :  { %127 = vmatpush.msra.mxu0 %v101_v7  ;;  %879 = vmatpush.msra.mxu3 %v101_v7  ;;  %v1283_v7 = vld [vmem:[%s1441_s3] sm:$0xff] }
  0x1d   :  { %852 = vmatmul.msk.f32.vlgmr.msra.gmra.mxu0 %vm105_vm0, %v99_v8  ;;  %910 = vset.pattern.permute.xlu0 %v1091_v10 }
  0x1e   :  { %853 = vmatmul.msk.f32.vlgmr.msra.gmra.mxu3 %vm105_vm0, %v100_v9  ;;  %189 = vperm.xlu0 %910, %v1190_v3  }
  0x1f   :  { %912 = vset.pattern.permute.xlu1 %v1092_v11  ;;  %914 = vset.pattern.permute.xlu2 %v1093_v12 }
  0x20   :  { %214 = vperm.xlu1 %912, %v1190_v3   ;;  %234 = vperm.xlu2 %914, %v1190_v3  }
  0x21   :  { %161 = vmatpush.msra.mxu1 %v138_v18  ;;  %344 = vmatpush.msra.mxu2 %v314_v50  ;;  %v458_v50 = vld [vmem:[%s1443_s5] sm:$0xff] }
  0x23   :  { %162 = vmatpush.msra.mxu1 %v137_v19 }
  0x24   :  { %854 = vmatmul.msk.f32.vlgmr.msra.gmra.mxu1 %vm105_vm0, %v135_v20 }
  0x26   :  { %917 = vset.pattern.permute.xlu0 %v1089_v1 }
  0x27   :  { %270 = vperm.xlu0 %917, %v1218_v13  }
  0x28   :  { %915 = vset.pattern.permute.xlu1 %v1088_v0  ;;  %916 = vset.pattern.permute.xlu2 %v1091_v10  ;;  %v364_v0 = vld [vmem:[%s1442_s4 + $0x10] sm:$0xff] }
  0x29   :  { %250 = vperm.xlu1 %915, %v1218_v13   ;;  %260 = vperm.xlu2 %916, %v1218_v13  }
  0x2c   :  { %855 = vmatmul.msk.f32.gmra.mxu1 %vm105_vm0, %v136_v25 }
  0x2f   :  { %922 = vset.pattern.permute.xlu0 %v1094_v14  ;;  %v365_v14 = vld [vmem:[%s1442_s4 + $0x18] sm:$0xff] }
  0x30   :  { %209 = vperm.xlu0 %922, %v1190_v3  }
  0x31   :  { %918 = vset.pattern.permute.xlu1 %v1092_v11  ;;  %919 = vset.pattern.permute.xlu2 %v1090_v2 }
  0x32   :  { %285 = vperm.xlu1 %918, %v1218_v13   ;;  %295 = vperm.xlu2 %919, %v1218_v13  }
  0x3a   :  { %920 = vset.pattern.permute.xlu1 %v1093_v12  ;;  %921 = vset.pattern.permute.xlu2 %v1095_v15  ;;  %v1296_v15 = vld [vmem:[%s1441_s3 + $0x8] sm:$0xff] }
  0x3b   :  { %305 = vperm.xlu1 %920, %v1218_v13   ;;  %174 = vperm.xlu2 %921, %v1190_v3  }
  0x43   :  { %245 = vperm.xlu2 %921, %v1218_v13  }
  0x71   :  { %v225_v24 = vpop.permute.xlu2 %224 }
  0x7a   :  { %v235_v32 = vpop.permute.xlu2 %234 }
  0x83   :  { %v261_v38 = vpop.permute.xlu2 %260 }
  0x87   :  { %v180_v22 = vpop.permute.xlu0 %179 }
  0x89   :  { %v200_v21 = vpop.permute.xlu1 %199 }
  0x8c   :  { %v296_v43 = vpop.permute.xlu2 %295 }
  0x90   :  { %v190_v26 = vpop.permute.xlu0 %189 }
  0x92   :  { %v215_v23 = vpop.permute.xlu1 %214 }
  0x95   :  { %v175_v52 = vpop.permute.xlu2 %174 }
  0x99   :  { %v271_v39 = vpop.permute.xlu0 %270 }
  0x9a   :  { %v1231_v27 = vpop.f32.mrf.mxu0 }
  0x9b   :  { %v202_v28 = vmul.f32 %v200_v21, %v1231_v27  ;;  %v192_v29 = vmul.f32 %v190_v26, %v1231_v27  ;;  %v182_v30 = vmul.f32 %v180_v22, %v1231_v27  ;;  %v251_v31 = vpop.permute.xlu1 %250  ;;  %v227_v35 = vmul.f32 %v225_v24, %v1231_v27  ;;  %v1305_v21 = vld [vmem:[%s1441_s3 + $0x10] sm:$0xff] }
  0x9c   :  { %v217_v36 = vmul.f32 %v215_v23, %v1231_v27  ;;  %v237_v41 = vmul.f32 %v235_v32, %v1231_v27  ;;  %v177_v56 = vmul.f32 %v175_v52, %v1231_v27 }
  0x9d   :  { %204 = vrot.lane.b32.xlu2 %v202_v28, %s1096_s0  ;;  %194 = vrot.lane.b32.xlu1 %v192_v29, %s1097_s6  ;;  %v246_v54 = vpop.permute.xlu2 %245  ;;  %v1313_v29 = vld [vmem:[%s1441_s3 + $0x18] sm:$0xff] }
  0x9e   :  { %184 = vrot.lane.b32.xlu0 %v182_v30, %s1098_s25 }
  0xa1   :  { %v1238_v33 = vpop.f32.mrf.mxu3  ;;  %v1256_v48 = vpop.f32.mrf.mxu1 }
  0xa2   :  { %v253_v34 = vmul.f32 %v251_v31, %v1238_v33  ;;  %v273_v40 = vmul.f32 %v271_v39, %v1238_v33  ;;  %v298_v44 = vmul.f32 %v296_v43, %v1238_v33  ;;  %v263_v45 = vmul.f32 %v261_v38, %v1238_v33  ;;  %864 = vmatpush.xpose.msk.msrb.mxu0 %vm316_vm1, %v1256_v48  ;;  %v210_v53 = vpop.permute.xlu0 %209  ;;  %v461_v38 = vld [vmem:[%s1443_s5 + $0x18] sm:$0xff]  ;;  %v460_v39 = vld [vmem:[%s1443_s5 + $0x10] sm:$0xff]  ;;  %s1108_s5 = smov 32  }
  0xa3   :  { %v212_v2 = vmul.f32 %v210_v53, %v1231_v27  ;;  %v248_v11 = vmul.f32 %v246_v54, %v1238_v33  ;;  %486 = vmatpush.msrb.mxu3 %v461_v38 }
  0xa4   :  { %v286_v37 = vpop.permute.xlu1 %285 }
  0xa5   :  { %229 = vrot.lane.b32.xlu2 %v227_v35, %s1097_s6  ;;  %219 = vrot.lane.b32.xlu1 %v217_v36, %s1098_s25  ;;  %v288_v47 = vmul.f32 %v286_v37, %v1238_v33 }
  0xa6   :  { %255 = vrot.lane.b32.xlu0 %v253_v34, %s1098_s25  ;;  %487 = vmatpush.msrb.mxu3 %v460_v39 }
  0xa8   :  { %488 = vmatpush.msrb.mxu3 %v459_v49 }
  0xa9   :  { %v1268_v63 = vpop.f32.mrf.mxu1 }
  0xaa   :  { %869 = vmatpush.xpose.msk.msrb.mxu2 %vm316_vm1, %v1268_v63  ;;  %489 = vmatpush.msrb.mxu3 %v458_v50 }
  0xad   :  { %275 = vrot.lane.b32.xlu2 %v273_v40, %s1096_s0  ;;  %239 = vrot.lane.b32.xlu1 %v237_v41, %s1096_s0  ;;  %v306_v42 = vpop.permute.xlu1 %305 }
  0xae   :  { %280 = vperm.xlu0 %922, %v1218_v13   ;;  %v308_v46 = vmul.f32 %v306_v42, %v1238_v33 }
  0xb5   :  { %300 = vrot.lane.b32.xlu2 %v298_v44, %s1097_s6  ;;  %265 = vrot.lane.b32.xlu1 %v263_v45, %s1097_s6 }
  0xb6   :  { %310 = vrot.lane.b32.xlu0 %v308_v46, %s1096_s0 }
  0xbd   :  { %290 = vrot.lane.b32.xlu1 %v288_v47, %s1098_s25  ;;  %376 = vrot.lane.b32.xlu2 %v363_v62, %s1099_s1 }
  0xbe   :  { %378 = vrot.lane.b32.xlu0 %v364_v0, %s1099_s1 }
  0xc5   :  { %374 = vrot.lane.b32.xlu1 %v362_v51, %s1099_s1  ;;  %414 = vrot.lane.b32.xlu2 %v1283_v7, %s1099_s1 }
  0xcd   :  { %380 = vrot.lane.b32.xlu1 %v365_v14, %s1099_s1  ;;  %416 = vrot.lane.b32.xlu2 %v1296_v15, %s1099_s1 }
  0xd5   :  { %418 = vrot.lane.b32.xlu2 %v1305_v21, %s1099_s1 }
  0xdd   :  { %420 = vrot.lane.b32.xlu2 %v1313_v29, %s1099_s1 }
  0xf7   :  { %v205_v59 = vpop.permute.xlu2 %204 }
  0xff   :  { %v230_v5 = vpop.permute.xlu2 %229 }
 0x107   :  { %v276_v16 = vpop.permute.xlu2 %275 }
 0x10f   :  { %v195_v55 = vpop.permute.xlu1 %194  ;;  %v301_v25 = vpop.permute.xlu2 %300 }
 0x110   :  { %v185_v57 = vpop.permute.xlu0 %184 }
 0x111   :  { %v187_v58 = vadd.f32 %v185_v57, %v177_v56 }
 0x113   :  { %v197_v60 = vadd.f32 %v195_v55, %v187_v58 }
 0x115   :  { %v207_v61 = vadd.f32 %v205_v59, %v197_v60 }
 0x117   :  { %856 = vmatmul.msk.f32.vlgmr.msra.gmra.mxu2 %vm316_vm1, %v207_v61  ;;  %865 = vmatmul.msk.f32.vlgmr.msrb.gmra.mxu0 %vm316_vm1, %v207_v61  ;;  %v220_v1 = vpop.permute.xlu1 %219  ;;  %v377_v34 = vpop.permute.xlu2 %376 }
 0x118   :  { %v222_v4 = vadd.f32 %v220_v1, %v212_v2  ;;  %v256_v8 = vpop.permute.xlu0 %255 }
 0x119   :  { %v258_v12 = vadd.f32 %v256_v8, %v248_v11 }
 0x11a   :  { %v232_v6 = vadd.f32 %v230_v5, %v222_v4 }
 0x11f   :  { %v240_v9 = vpop.permute.xlu1 %239 }
 0x120   :  { %v242_v10 = vadd.f32 %v240_v9, %v232_v6  ;;  %v281_v19 = vpop.permute.xlu0 %280 }
 0x121   :  { %v283_v22 = vmul.f32 %v281_v19, %v1238_v33 }
 0x122   :  { %857 = vmatmul.msk.f32.gmra.mxu2 %vm316_vm1, %v242_v10  ;;  %866 = vmatmul.msk.f32.gmra.mxu0 %vm316_vm1, %v242_v10 }
 0x127   :  { %v266_v17 = vpop.permute.xlu1 %265 }
 0x128   :  { %v268_v18 = vadd.f32 %v266_v17, %v258_v12  ;;  %v311_v27 = vpop.permute.xlu0 %310 }
 0x12a   :  { %v278_v20 = vadd.f32 %v276_v16, %v268_v18 }
 0x12c   :  { %858 = vmatmul.msk.f32.gmra.mxu2 %vm316_vm1, %v278_v20 }
 0x12f   :  { %v291_v23 = vpop.permute.xlu1 %290 }
 0x130   :  { %v293_v24 = vadd.f32 %v291_v23, %v283_v22  ;;  %v379_v40 = vpop.permute.xlu0 %378 }
 0x132   :  { %v303_v26 = vadd.f32 %v301_v25, %v293_v24 }
 0x134   :  { %v313_v28 = vadd.f32 %v311_v27, %v303_v26 }
 0x136   :  { %859 = vmatmul.msk.f32.gmra.mxu2 %vm316_vm1, %v313_v28 }
 0x137   :  { %v375_v30 = vpop.permute.xlu1 %374 }
 0x13e   :  { %870 = vmatmul.msk.f32.vlgmr.msrb.gmra.mxu2 %vm316_vm1, %v278_v20 }
 0x13f   :  { %v381_v44 = vpop.permute.xlu1 %380 }
 0x146   :  { %871 = vmatmul.msk.f32.gmra.mxu2 %vm316_vm1, %v313_v28 }
 0x19a   :  { %v346_v31 = vpop.f32.mrf.mxu2 }
 0x19b   :  { %v430_v32 = vmul.f32 %v362_v51, %v346_v31  ;;  %v386_v33 = vmul.f32 %v375_v30, %v346_v31  ;;  %v415_v51 = vpop.permute.xlu2 %414  ;;  %v366_v53 = vmul.f32 %v1283_v7, %v346_v31 }
 0x19c   :  { %v426_v52 = vmul.f32 %v415_v51, %v346_v31 }
 0x19d   :  { %438 = vrot.lane.b32.xlu1 %v430_v32, %s1099_s1  ;;  %394 = vrot.lane.b32.xlu0 %v386_v33, %s1098_s25 }
 0x1a3   :  { %v417_v59 = vpop.permute.xlu2 %416 }
 0x1a5   :  { %v349_v35 = vpop.f32.mrf.mxu2 }
 0x1a6   :  { %v431_v36 = vmul.f32 %v363_v62, %v349_v35  ;;  %v387_v37 = vmul.f32 %v377_v34, %v349_v35  ;;  %v427_v60 = vmul.f32 %v417_v59, %v349_v35  ;;  %v367_v61 = vmul.f32 %v1296_v15, %v349_v35 }
 0x1a8   :  { %440 = vrot.lane.b32.xlu1 %v431_v36, %s1099_s1  ;;  %396 = vrot.lane.b32.xlu0 %v387_v37, %s1098_s25 }
 0x1ab   :  { %v419_v5 = vpop.permute.xlu2 %418 }
 0x1af   :  { %v352_v41 = vpop.f32.mrf.mxu2 }
 0x1b0   :  { %v432_v42 = vmul.f32 %v364_v0, %v352_v41  ;;  %v388_v43 = vmul.f32 %v379_v40, %v352_v41  ;;  %v428_v6 = vmul.f32 %v419_v5, %v352_v41  ;;  %v368_v7 = vmul.f32 %v1305_v21, %v352_v41  ;;  %v523_v21 = vpop.f32.mrf.mxu0 }
 0x1b2   :  { %442 = vrot.lane.b32.xlu1 %v432_v42, %s1099_s1  ;;  %398 = vrot.lane.b32.xlu0 %v388_v43, %s1098_s25 }
 0x1b8   :  { %v526_v26 = vpop.f32.mrf.mxu0 }
 0x1b9   :  { %v355_v45 = vpop.f32.mrf.mxu2 }
 0x1ba   :  { %v433_v46 = vmul.f32 %v365_v14, %v355_v45  ;;  %v389_v47 = vmul.f32 %v381_v44, %v355_v45  ;;  %v421_v14 = vpop.permute.xlu2 %420  ;;  %v369_v16 = vmul.f32 %v1313_v29, %v355_v45 }
 0x1bb   :  { %v429_v15 = vmul.f32 %v421_v14, %v355_v45 }
 0x1bc   :  { %444 = vrot.lane.b32.xlu1 %v433_v46, %s1099_s1  ;;  %400 = vrot.lane.b32.xlu0 %v389_v47, %s1098_s25 }
 0x1c1   :  { %v668_v30 = vpop.f32.mrf.mxu2 }
 0x1c9   :  { %v671_v34 = vpop.f32.mrf.mxu2 }
 0x20f   :  { %v439_v54 = vpop.permute.xlu1 %438  ;;  %v395_v55 = vpop.permute.xlu0 %394 }
 0x210   :  { %v450_v56 = vsub.f32 %v426_v52, %v439_v54  ;;  %v406_v57 = vadd.f32 %v395_v55, %v366_v53  ;;  %v1100_v52 = vmov 13  }
 0x211   :  { %924 = vset.pattern.permute.xlu2 %v1100_v52 }
 0x212   :  { %v454_v58 = vsel %vm316_vm1, %v406_v57, %v450_v56 }
 0x213   :  { %860 = vmatmul.msk.f32.vlgmr.msrb.gmra.mxu3 %vm105_vm0, %v454_v58 }
 0x21a   :  { %v441_v62 = vpop.permute.xlu1 %440  ;;  %v397_v0 = vpop.permute.xlu0 %396 }
 0x21b   :  { %v451_v1 = vsub.f32 %v427_v60, %v441_v62  ;;  %v407_v2 = vadd.f32 %v397_v0, %v367_v61  ;;  %v1101_v60 = vmov 14   ;;  %v1102_v61 = vmov 10  }
 0x21c   :  { %925 = vset.pattern.permute.xlu1 %v1102_v61  ;;  %v1104_v62 = vmov 15   ;;  %v1105_v0 = vmov 11  }
 0x21d   :  { %v455_v4 = vsel %vm316_vm1, %v407_v2, %v451_v1 }
 0x21e   :  { %861 = vmatmul.msk.f32.gmra.mxu3 %vm105_vm0, %v455_v4 }
 0x224   :  { %v443_v8 = vpop.permute.xlu1 %442  ;;  %v399_v9 = vpop.permute.xlu0 %398 }
 0x225   :  { %v452_v10 = vsub.f32 %v428_v6, %v443_v8  ;;  %v408_v11 = vadd.f32 %v399_v9, %v368_v7  ;;  %v1107_v6 = vmov 8  }
 0x227   :  { %v456_v12 = vsel %vm316_vm1, %v408_v11, %v452_v10 }
 0x228   :  { %862 = vmatmul.msk.f32.gmra.mxu3 %vm105_vm0, %v456_v12 }
 0x22e   :  { %v445_v17 = vpop.permute.xlu1 %444  ;;  %v401_v18 = vpop.permute.xlu0 %400 }
 0x22f   :  { %v453_v19 = vsub.f32 %v429_v15, %v445_v17  ;;  %v409_v20 = vadd.f32 %v401_v18, %v369_v16 }
 0x231   :  { %v457_v22 = vsel %vm316_vm1, %v409_v20, %v453_v19 }
 0x232   :  { %863 = vmatmul.msk.f32.gmra.mxu3 %vm105_vm0, %v457_v22 }
 0x296   :  { %v491_v23 = vpop.f32.mrf.mxu3 }
 0x297   :  { %v529_v24 = vadd.f32 %v523_v21, %v491_v23 }
 0x299   :  { %v532_v25 = vsel %vm531_vm2, %v529_v24, -inf }
 0x29a   :  { %533 = vmax.xlane.f32.xlu2 %v532_v25 }
 0x2a1   :  { %v494_v27 = vpop.f32.mrf.mxu3 }
 0x2a2   :  { %v530_v28 = vadd.f32 %v526_v26, %v494_v27 }
 0x2a4   :  { %v535_v29 = vsel %vm531_vm2, %v530_v28, -inf }
 0x2a5   :  { %536 = vmax.xlane.f32.xlu0 %v535_v29 }
 0x2ab   :  { %v497_v31 = vpop.f32.mrf.mxu3 }
 0x2ac   :  { %v674_v32 = vadd.f32 %v668_v30, %v497_v31 }
 0x2ae   :  { %v676_v33 = vsel %vm531_vm2, %v674_v32, -inf }
 0x2af   :  { %677 = vmax.xlane.f32.xlu1 %v676_v33 }
 0x2b5   :  { %v500_v35 = vpop.f32.mrf.mxu3 }
 0x2b6   :  { %v675_v36 = vadd.f32 %v671_v34, %v500_v35 }
 0x2b8   :  { %v679_v37 = vsel %vm531_vm2, %v675_v36, -inf }
 0x2b9   :  { %680 = vmax.xlane.f32.xlu2 %v679_v37 }
 0x30d   :  { %v534_v38 = vpop.xlane.xlu2 %533 }
 0x30e   :  { %v538_v39 = vsub.f32 %v529_v24, %v534_v38 }
 0x310   :  { %v540_v40 = vmul.f32 1.442695, %v538_v39 }
 0x312   :  { %938 = vpow2.f32 %v540_v40 }
 0x318   :  { %v939_v41 = vpop.eup %938  ;;  %v537_v42 = vpop.xlane.xlu0 %536 }
 0x319   :  { %v539_v43 = vsub.f32 %v530_v28, %v537_v42  ;;  %v544_v44 = vsel %vm531_vm2, %v939_v41, 0.0 }
 0x31a   :  { %545 = vadd.xlane.f32.xlu2 %v544_v44 }
 0x31b   :  { %v542_v45 = vmul.f32 1.442695, %v539_v43 }
 0x31d   :  { %940 = vpow2.f32 %v542_v45 }
 0x322   :  { %v678_v46 = vpop.xlane.xlu1 %677 }
 0x323   :  { %v1357_v47 = vpop.eup %940  ;;  %v682_v49 = vsub.f32 %v674_v32, %v678_v46 }
 0x324   :  { %v547_v50 = vsel %vm531_vm2, %v1357_v47, 0.0 }
 0x325   :  { %v684_v51 = vmul.f32 1.442695, %v682_v49  ;;  %548 = vadd.xlane.f32.xlu0 %v547_v50 }
 0x327   :  { %942 = vpow2.f32 %v684_v51 }
 0x32c   :  { %v681_v53 = vpop.xlane.xlu2 %680 }
 0x32d   :  { %v1361_v54 = vpop.eup %942  ;;  %v683_v55 = vsub.f32 %v675_v36, %v681_v53 }
 0x32e   :  { %v688_v56 = vsel %vm531_vm2, %v1361_v54, 0.0 }
 0x32f   :  { %v686_v57 = vmul.f32 1.442695, %v683_v55  ;;  %689 = vadd.xlane.f32.xlu1 %v688_v56 }
 0x331   :  { %944 = vpow2.f32 %v686_v57 }
 0x332   :  { %554 = vrot.lane.b32.xlu2 %v1256_v48, %s1098_s25  ;;  %v1103_v48 = vmov 9  }
 0x333   :  { %923 = vset.pattern.permute.xlu0 %v1103_v48 }
 0x337   :  { %v1367_v58 = vpop.eup %944 }
 0x338   :  { %v691_v59 = vsel %vm531_vm2, %v1367_v58, 0.0 }
 0x339   :  { %692 = vadd.xlane.f32.xlu0 %v691_v59  ;;  %v798_v59 = vld [vmem:[%s1447_s9 + $0x30] sm:$0xff] }
 0x33a   :  { %603 = vperm.xlu2 %924, %v1190_v3  }
 0x342   :  { %926 = vset.pattern.permute.xlu2 %v1101_v60 }
 0x343   :  { %614 = vperm.xlu2 %926, %v1190_v3  }
 0x348   :  { %698 = vrot.lane.b32.xlu1 %v1268_v63, %s1098_s25  ;;  %v1106_v63 = vmov 12   ;;  %s1109_s25 = smov 48  }
 0x34b   :  { %928 = vset.pattern.permute.xlu2 %v1104_v62 }
 0x34c   :  { %625 = vperm.xlu2 %928, %v1190_v3  }
 0x34d   :  { %598 = vperm.xlu0 %923, %v1190_v3  }
 0x350   :  { %609 = vperm.xlu1 %925, %v1190_v3  }
 0x354   :  { %930 = vset.pattern.permute.xlu2 %v1100_v52 }
 0x355   :  { %931 = vset.pattern.permute.xlu0 %v1102_v61  ;;  %747 = vperm.xlu2 %930, %v1218_v13   ;;  %v796_v61 = vld [vmem:[%s1447_s9 + $0x20] sm:$0xff] }
 0x356   :  { %753 = vperm.xlu0 %931, %v1218_v13  }
 0x358   :  { %927 = vset.pattern.permute.xlu1 %v1105_v0 }
 0x359   :  { %620 = vperm.xlu1 %927, %v1190_v3  }
 0x35d   :  { %933 = vset.pattern.permute.xlu2 %v1105_v0  ;;  %v793_v0 = vld [vmem:[%s1447_s9 + $0x8] sm:$0xff] }
 0x35e   :  { %936 = vset.pattern.permute.xlu0 %v1106_v63  ;;  %764 = vperm.xlu2 %933, %v1218_v13   ;;  %v792_v63 = vld [vmem:[%s1447_s9] sm:$0xff] }
 0x35f   :  { %592 = vperm.xlu0 %936, %v1190_v3  }
 0x361   :  { %929 = vset.pattern.permute.xlu1 %v1103_v48  ;;  %v795_v48 = vld [vmem:[%s1447_s9 + $0x18] sm:$0xff] }
 0x362   :  { %742 = vperm.xlu1 %929, %v1218_v13  }
 0x366   :  { %935 = vset.pattern.permute.xlu2 %v1107_v6 }
 0x367   :  { %736 = vperm.xlu0 %936, %v1218_v13   ;;  %587 = vperm.xlu2 %935, %v1190_v3  }
 0x36a   :  { %932 = vset.pattern.permute.xlu1 %v1101_v60  ;;  %v797_v60 = vld [vmem:[%s1447_s9 + $0x28] sm:$0xff] }
 0x36b   :  { %758 = vperm.xlu1 %932, %v1218_v13  }
 0x36f   :  { %937 = vset.pattern.permute.xlu0 %v1104_v62  ;;  %731 = vperm.xlu2 %935, %v1218_v13  }
 0x373   :  { %934 = vset.pattern.permute.xlu1 %v1104_v62  ;;  %v794_v62 = vld [vmem:[%s1447_s9 + $0x10] sm:$0xff] }
 0x374   :  { %769 = vperm.xlu1 %934, %v1218_v13  }
 0x38d   :  { %v546_v1 = vpop.xlane.xlu2 %545 }
 0x38e   :  { %946 = vrcp.f32 %v546_v1 }
 0x394   :  { %v947_v2 = vpop.eup %946 }
 0x395   :  { %v555_v4 = vpop.permute.xlu2 %554  ;;  %v552_v5 = vmul.f32 %v947_v2, %v939_v41 }
 0x396   :  { %578 = vmatpush.msrb.mxu1 %v555_v4 }
 0x397   :  { %867 = vmatmul.msk.f32.vlgmr.msrb.gmra.mxu1 %vm531_vm2, %v552_v5 }
 0x398   :  { %v549_v7 = vpop.xlane.xlu0 %548 }
 0x399   :  { %948 = vrcp.f32 %v549_v7 }
 0x39d   :  { %v604_v13 = vpop.permute.xlu2 %603 }
 0x39f   :  { %v949_v8 = vpop.eup %948 }
 0x3a0   :  { %v553_v9 = vmul.f32 %v949_v8, %v1357_v47 }
 0x3a2   :  { %868 = vmatmul.msk.f32.gmra.mxu1 %vm531_vm2, %v553_v9  ;;  %v690_v10 = vpop.xlane.xlu1 %689 }
 0x3a3   :  { %950 = vrcp.f32 %v690_v10 }
 0x3a5   :  { %v615_v17 = vpop.permute.xlu2 %614 }
 0x3a9   :  { %v951_v12 = vpop.eup %950 }
 0x3aa   :  { %v696_v3 = vmul.f32 %v951_v12, %v1361_v54 }
 0x3ac   :  { %v693_v11 = vpop.xlane.xlu0 %692 }
 0x3ad   :  { %952 = vrcp.f32 %v693_v11  ;;  %v626_v19 = vpop.permute.xlu2 %625 }
 0x3b3   :  { %v953_v15 = vpop.eup %952 }
 0x3b4   :  { %v697_v16 = vmul.f32 %v953_v15, %v1367_v58  ;;  %v799_v58 = vld [vmem:[%s1447_s9 + $0x38] sm:$0xff]  ;;  %s1110_s9 = smov [#allocation11]  }
 0x3b5   :  { %v748_v27 = vpop.permute.xlu2 %747  ;;  %814 = vmatpush.msra.mxu1 %v799_v58  ;;  %s835_s17 = sshll.u32 %s1110_s9, 4  ;;  %s836_s17 = int_to_ptr.vmem [resolvable:$true] %s835_s17 }
 0x3b7   :  { %815 = vmatpush.msra.mxu1 %v798_v59 }
 0x3b9   :  { %816 = vmatpush.msra.mxu1 %v797_v60 }
 0x3ba   :  { %v699_v14 = vpop.permute.xlu1 %698 }
 0x3bb   :  { %722 = vmatpush.msra.mxu0 %v699_v14  ;;  %817 = vmatpush.msra.mxu1 %v796_v61 }
 0x3bc   :  { %872 = vmatmul.msk.f32.vlgmr.msra.gmra.mxu0 %vm531_vm2, %v696_v3 }
 0x3bd   :  { %v765_v35 = vpop.permute.xlu2 %764  ;;  %818 = vmatpush.msra.mxu1 %v795_v48 }
 0x3bf   :  { %v599_v22 = vpop.permute.xlu0 %598  ;;  %819 = vmatpush.msra.mxu1 %v794_v62 }
 0x3c1   :  { %820 = vmatpush.msra.mxu1 %v793_v0 }
 0x3c2   :  { %v610_v20 = vpop.permute.xlu1 %609 }
 0x3c3   :  { %821 = vmatpush.msra.mxu1 %v792_v63 }
 0x3c4   :  { %873 = vmatmul.msk.f32.gmra.mxu0 %vm531_vm2, %v697_v16 }
 0x3c5   :  { %v588_v38 = vpop.permute.xlu2 %587 }
 0x3c8   :  { %v754_v36 = vpop.permute.xlu0 %753 }
 0x3cb   :  { %v621_v30 = vpop.permute.xlu1 %620 }
 0x3cd   :  { %v732_v41 = vpop.permute.xlu2 %731 }
 0x3d1   :  { %v593_v39 = vpop.permute.xlu0 %592 }
 0x3d4   :  { %v743_v34 = vpop.permute.xlu1 %742 }
 0x3d9   :  { %v737_v43 = vpop.permute.xlu0 %736 }
 0x3dd   :  { %v759_v37 = vpop.permute.xlu1 %758 }
 0x3e6   :  { %v770_v42 = vpop.permute.xlu1 %769 }
 0x414   :  { %v1396_v18 = vpop.f32.mrf.mxu1 }
 0x415   :  { %v601_v23 = vmul.f32 %v599_v22, %v1396_v18  ;;  %v612_v24 = vmul.f32 %v610_v20, %v1396_v18  ;;  %v623_v32 = vmul.f32 %v621_v30, %v1396_v18  ;;  %v590_v4 = vmul.f32 %v588_v38, %v1396_v18 }
 0x41f   :  { %v583_v21 = vpop.f32.mrf.mxu1 }
 0x420   :  { %v606_v25 = vmul.f32 %v604_v13, %v583_v21  ;;  %v617_v26 = vmul.f32 %v615_v17, %v583_v21  ;;  %v628_v31 = vmul.f32 %v626_v19, %v583_v21  ;;  %v595_v1 = vmul.f32 %v593_v39, %v583_v21 }
 0x422   :  { %v607_v28 = vadd.f32 %v606_v25, %v601_v23  ;;  %v618_v29 = vadd.f32 %v617_v26, %v612_v24  ;;  %v629_v33 = vadd.f32 %v628_v31, %v623_v32  ;;  %v596_v5 = vadd.f32 %v595_v1, %v590_v4 }
 0x424   :  { %631 = vrot.lane.b32.xlu1 %v607_v28, %s1099_s1  ;;  %635 = vrot.lane.b32.xlu2 %v618_v29, %s1108_s5 }
 0x42c   :  { %639 = vrot.lane.b32.xlu1 %v629_v33, %s1109_s25 }
 0x439   :  { %v724_v40 = vpop.f32.mrf.mxu0 }
 0x43a   :  { %v745_v44 = vmul.f32 %v743_v34, %v724_v40  ;;  %v756_v45 = vmul.f32 %v754_v36, %v724_v40  ;;  %v767_v46 = vmul.f32 %v765_v35, %v724_v40  ;;  %v734_v47 = vmul.f32 %v732_v41, %v724_v40 }
 0x441   :  { %v727_v49 = vpop.f32.mrf.mxu0 }
 0x442   :  { %v750_v50 = vmul.f32 %v748_v27, %v727_v49  ;;  %v761_v51 = vmul.f32 %v759_v37, %v727_v49  ;;  %v772_v52 = vmul.f32 %v770_v42, %v727_v49  ;;  %v739_v53 = vmul.f32 %v737_v43, %v727_v49 }
 0x444   :  { %v740_v54 = vadd.f32 %v739_v53, %v734_v47  ;;  %v762_v55 = vadd.f32 %v761_v51, %v756_v45  ;;  %v751_v56 = vadd.f32 %v750_v50, %v745_v44  ;;  %v773_v57 = vadd.f32 %v772_v52, %v767_v46 }
 0x446   :  { %779 = vrot.lane.b32.xlu2 %v762_v55, %s1108_s5  ;;  %775 = vrot.lane.b32.xlu1 %v751_v56, %s1099_s1 }
 0x447   :  { %783 = vrot.lane.b32.xlu0 %v773_v57, %s1109_s25 }
 0x47e   :  { %v636_v7 = vpop.permute.xlu2 %635 }
 0x496   :  { %v632_v2 = vpop.permute.xlu1 %631 }
 0x497   :  { %v642_v6 = vsel %vm316_vm1, %v596_v5, %v632_v2 }
 0x498   :  { %v643_v9 = vsel %vm105_vm0, %v642_v6, %v636_v7 }
 0x49e   :  { %v640_v8 = vpop.permute.xlu1 %639 }
 0x49f   :  { %v645_v10 = vsel %vm644_vm3, %v643_v9, %v640_v8 }
 0x4a0   :  { %647 = vst.msk [vmem:[#allocation2] sm:$0xff] %vm646_vm4, %v645_v10  ;;  %v780_v3 = vpop.permute.xlu2 %779 }
 0x4a7   :  { %v790_v11 = vld [vmem:[#allocation2] sm:$0xff] }
 0x4a8   :  { %874 = vmatmul.msk.f32.vlgmr.msra.gmra.mxu1 %vm646_vm4, %v790_v11 }
 0x4b8   :  { %v776_v12 = vpop.permute.xlu1 %775 }
 0x4b9   :  { %v786_v14 = vsel %vm316_vm1, %v740_v54, %v776_v12  ;;  %v784_v15 = vpop.permute.xlu0 %783 }
 0x4ba   :  { %v787_v16 = vsel %vm105_vm0, %v786_v14, %v780_v3 }
 0x4bb   :  { %v788_v13 = vsel %vm644_vm3, %v787_v16, %v784_v15 }
 0x4bc   :  { %789 = vst.msk [vmem:[#allocation2 + $0x8] sm:$0xff] %vm646_vm4, %v788_v13 }
 0x4c3   :  { %v791_v17 = vld [vmem:[#allocation2 + $0x8] sm:$0xff] }
 0x4c4   :  { %875 = vmatmul.msk.f32.gmra.mxu1 %vm646_vm4, %v791_v17 }
 0x525   :  { %v823_v18 = vpop.f32.mrf.mxu1 }
 0x526   :  { %829 = vst [vmem:[#allocation11] sm:$0xff] %v823_v18 }
 0x541   :  { %v826_v19 = vpop.f32.mrf.mxu1 }
 0x542   :  { %830 = vst [vmem:[#allocation11 + $0x8] sm:$0xff] %v826_v19 }
 0x543   :  { %843 = dma.vmem_to_hbm [thread:$0]  %s836_s17, 256, %s838_s19, [#allocation5], %s1083_s21, %s1083_s21, %s1084_s22  }
 0x544   :  { %1080 = dma.done.wait [#allocation5], 256  }
 0x545   :  { %1081 = vsyncadd [#allocation5], 4294967040 }
 0x546   :  { %848 = vsyncpa [#allocation4], 1 }
 0x547   :  { %849 = vsyncpa [#allocation7], 1 }
 0x548   :  { %850 = vsyncpa [#allocation10], 1 }
 0x549   :  { %851 = vsyncpa [#allocation5], 1 }

</bundles_post_ra>
